<compile_context>
chip_gen: v7x
topology: tpu7x:2x2x1
jax: 0.10.0
libtpu: 0.0.40
codegen_flags: <defaults>
</compile_context>

<pallas_src>
from functools import partial

import jax
import jax.numpy as jnp
from jax.experimental import pallas as pl
from jax.experimental.pallas import tpu as pltpu


def _round_up(x, m):
    return ((x + m - 1) // m) * m


def _cdiv(a, b):
    return -(-a // b)


# ----------------------------- Pallas kernel --------------------------------
def qtran_qnet_kernel(
    x_ref,      # (Fp, TB)  bf16  transposed [state|action|hidden|0pad] tile
    w1_ref,     # (2H, Fp)  bf16  block-diag [w_sa1^T ; w_h1^T]
    b1_ref,     # (2H, 1)   f32
    weff_ref,   # (H, 2H)   bf16  fused  w_q1^T @ blockdiag(w_sa2^T, w_h2^T)
    beff_ref,   # (H, 1)    f32   fused  w_q1^T @ b2 + b_q1
    wq2_ref,    # (H, 1)    f32   final projection column
    bq2_ref,    # (1, 1)    f32
    q_ref,      # (1, TB)   f32   lane-dense output row
):
    f32 = jnp.float32
    bf16 = jnp.bfloat16

    x = x_ref[...]                                                    # (Fp, TB) bf16

    # Packed encoder layer 1 (sa_encoder L1 + h_encoder L1), ReLU.    MXU pass 1.
    h1 = jnp.dot(w1_ref[...], x, preferred_element_type=f32) + b1_ref[...]
    h1 = jnp.maximum(h1, 0.0)                                         # (2H, TB) f32

    # Fused [encoder layer 2 ; q_encoder layer 1], ReLU.              MXU pass 2.
    z = jnp.dot(weff_ref[...], h1.astype(bf16),
                preferred_element_type=f32) + beff_ref[...]
    z = jnp.maximum(z, 0.0)                                           # (H, TB) f32

    # q_encoder layer 2 (out_features == 1): VPU multiply + XLU sublane reduce
    # instead of an N=1 MXU pass.  Result is lane-dense (1, TB).
    q = jnp.sum(z * wq2_ref[...], axis=0, keepdims=True) + bq2_ref[...]
    q_ref[...] = q.astype(q_ref.dtype)


# ------------------------------ weight packing -------------------------------
def pack_params(params, state_shape, hidden_shape, n_agents):
    """One-time prep: transposed, block-diagonal, layer-fused, bf16 weights."""
    H = hidden_shape
    half = H // 2
    SA = state_shape + n_agents
    HN = H * n_agents
    F = SA + HN
    F_pad = _round_up(F, 16)        # bf16 sublane-tile alignment of the x slab
    bf16 = jnp.bfloat16

    # Block-diagonal layer 1 (sa_encoder L1 | h_encoder L1), transposed, F-padded.
    w1t = jnp.zeros((2 * H, F_pad), jnp.float32)
    w1t = w1t.at[:H, :SA].set(params["w_sa1"].T)
    w1t = w1t.at[H:, SA:F].set(params["w_h1"].T)
    b1t = jnp.concatenate([params["b_sa1"], params["b_h1"]], axis=1).T   # (2H, 1)

    # Encoder layer 2 (no ReLU after) fused with q_encoder layer 1:
    #   y = blockdiag(w_sa2^T, w_h2^T) @ h1 + b2   (rows = [sa_hidden ; h_hidden])
    #   z_pre = w_q1^T @ y + b_q1  ==  w_eff @ h1 + b_eff
    w2t = jnp.zeros((H, 2 * H), jnp.float32)
    w2t = w2t.at[:half, :H].set(params["w_sa2"].T)
    w2t = w2t.at[half:, H:].set(params["w_h2"].T)
    b2t = jnp.concatenate([params["b_sa2"], params["b_h2"]], axis=1).T   # (H, 1)

    wq1t = params["w_q1"].T                                              # (H, H)
    weff = wq1t @ w2t                                                    # (H, 2H)
    beff = wq1t @ b2t + params["b_q1"].T                                 # (H, 1)

    return dict(
        w1t=w1t.astype(bf16), b1t=b1t,
        weff=weff.astype(bf16), beff=beff,
        wq2=params["w_q2"],                                              # (H, 1) f32
        bq2=params["b_q2"],                                              # (1, 1) f32
    )


# ------------------------------ tile selection --------------------------------
def _choose_tb(B, tb_max=2048, lane=128):
    """Pick the batch tile TB: multiple of 128, <= tb_max, padding waste <~10%,
    preferring >=2 (even) grid steps so v7x can shard the batch across both TCs,
    and within that the fewest steps (largest TB) to amortize per-step overhead."""
    B_lane = _round_up(B, lane)
    if B_lane <= lane:
        return lane                       # tiny batch: one minimal tile
    best = None
    max_steps = min(B_lane // lane, 64)
    for n_steps in range(1, max_steps + 1):
        tb = min(tb_max, _round_up(_cdiv(B, n_steps), lane))
        b_pad = _round_up(B, tb)
        steps = b_pad // tb
        waste = (b_pad - B) / b_pad
        if waste <= 0.10:
            key = (0, steps == 1, steps % 2, steps, waste)
        else:
            key = (1, waste, steps == 1, steps % 2, steps)
        if best is None or key < best[0]:
            best = (key, tb)
    return best[1]


# ------------------------------ Python wrapper -------------------------------
def qtran_qnet_forward(packed, state, action, hidden,
                       state_shape, hidden_shape, n_agents, tb_max=2048):
    """Mirrors QtranQnet.forward. Returns q of shape (n_episode, -1)."""
    n_episode = state.shape[0]
    H = hidden_shape
    F = state_shape + n_agents + H * n_agents
    F_pad = _round_up(F, 16)
    bf16 = jnp.bfloat16

    s = state.reshape(-1, state_shape)
    a = action.reshape(-1, n_agents)
    h = hidden.reshape(-1, H * n_agents)
    B = s.shape[0]

    TB = _choose_tb(B, tb_max)
    B_pad = _round_up(B, TB)
    pad_b = B_pad - B

    # Build the transposed activation slab xt = [s ; a ; h ; 0pad]^T directly so
    # XLA fuses cast+transpose+pad into the single concat that writes xt once
    # (no separate (B, F) materialization followed by an unfused transpose).
    def to_cols(v):
        vt = v.astype(bf16).T
        return jnp.pad(vt, ((0, 0), (0, pad_b))) if pad_b else vt

    parts = [to_cols(s), to_cols(a), to_cols(h)]
    if F_pad > F:
        parts.append(jnp.zeros((F_pad - F, B_pad), bf16))
    xt = jnp.concatenate(parts, axis=0)                           # (F_pad, B_pad)

    grid = (B_pad // TB,)
    const = lambda i: (0, 0)   # weights/biases stay VMEM-resident across the grid

    in_specs = [
        pl.BlockSpec((F_pad, TB), lambda i: (0, i)),     # activation tile
        pl.BlockSpec((2 * H, F_pad), const),             # w1t  (block-diag L1)
        pl.BlockSpec((2 * H, 1), const),                 # b1t
        pl.BlockSpec((H, 2 * H), const),                 # weff (fused L2 + q L1)
        pl.BlockSpec((H, 1), const),                     # beff
        pl.BlockSpec((H, 1), const),                     # wq2
        pl.BlockSpec((1, 1), const),                     # bq2
    ]

    q_row = pl.pallas_call(
        qtran_qnet_kernel,
        out_shape=jax.ShapeDtypeStruct((1, B_pad), jnp.float32),
        grid=grid,
        in_specs=in_specs,
        out_specs=pl.BlockSpec((1, TB), lambda i: (0, i)),   # lane-dense output
        compiler_params=pltpu.CompilerParams(
            dimension_semantics=("parallel",)),              # batch across TCs (v7x)
    )(xt, packed["w1t"], packed["b1t"], packed["weff"], packed["beff"],
      packed["wq2"], packed["bq2"])

    return q_row[0, :B].reshape(n_episode, -1)


# ------------------------------ parameter init -------------------------------
def init_params(key, state_shape, hidden_shape, n_agents):
    """PyTorch-style Linear init: U(-1/sqrt(fan_in), 1/sqrt(fan_in)).
    Weights stored (in_features, out_features); biases (1, out_features)."""
    sapair_shape = state_shape + n_agents
    half = hidden_shape // 2

    def linear(key, fan_in, fan_out):
        kw, kb = jax.random.split(key)
        bound = 1.0 / (fan_in ** 0.5)
        w = jax.random.uniform(kw, (fan_in, fan_out), jnp.float32, -bound, bound)
        b = jax.random.uniform(kb, (1, fan_out), jnp.float32, -bound, bound)
        return w, b

    keys = jax.random.split(key, 6)
    p = {}
    p["w_sa1"], p["b_sa1"] = linear(keys[0], sapair_shape, hidden_shape)
    p["w_sa2"], p["b_sa2"] = linear(keys[1], hidden_shape, half)
    p["w_h1"], p["b_h1"] = linear(keys[2], hidden_shape * n_agents, hidden_shape)
    p["w_h2"], p["b_h2"] = linear(keys[3], hidden_shape, half)
    p["w_q1"], p["b_q1"] = linear(keys[4], hidden_shape, hidden_shape)
    p["w_q2"], p["b_q2"] = linear(keys[5], hidden_shape, 1)
    return p


# ---------------------------------- main --------------------------------------
if __name__ == "__main__":
    STATE_SHAPE = 16
    HIDDEN_SHAPE = 32
    N_AGENTS = 4
    N_EPISODE = 2
    T = 8  # timesteps per episode

    root = jax.random.PRNGKey(0)
    k_param, k_state, k_action, k_hidden = jax.random.split(root, 4)

    params = init_params(k_param, STATE_SHAPE, HIDDEN_SHAPE, N_AGENTS)
    packed = pack_params(params, STATE_SHAPE, HIDDEN_SHAPE, N_AGENTS)

    # Inputs shaped (n_episode, T, ...) — forward flattens leading dims.
    state = jax.random.normal(k_state, (N_EPISODE, T, STATE_SHAPE), jnp.float32)
    action = jax.random.normal(k_action, (N_EPISODE, T, N_AGENTS), jnp.float32)
    hidden = jax.random.normal(
        k_hidden, (N_EPISODE, T, N_AGENTS, HIDDEN_SHAPE), jnp.float32)

    forward = jax.jit(partial(qtran_qnet_forward,
                              state_shape=STATE_SHAPE,
                              hidden_shape=HIDDEN_SHAPE,
                              n_agents=N_AGENTS))

    q = forward(packed, state, action, hidden)
    q = jax.block_until_ready(q)
    assert q.shape == (N_EPISODE, T), q.shape

    # Reference 1 (tight): same fused weights, same bf16-matmul / f32-accumulate
    # precision as the kernel — checks the Pallas mechanics.
    def ref_matched(packed, state, action, hidden):
        bf, f32 = jnp.bfloat16, jnp.float32
        F = STATE_SHAPE + N_AGENTS + HIDDEN_SHAPE * N_AGENTS
        F_pad = _round_up(F, 16)
        s = state.reshape(-1, STATE_SHAPE)
        a = action.reshape(-1, N_AGENTS)
        h = hidden.reshape(-1, HIDDEN_SHAPE * N_AGENTS)
        x = jnp.concatenate([s, a, h], axis=1).astype(bf)
        x = jnp.pad(x, ((0, 0), (0, F_pad - F)))
        h1 = jnp.maximum(
            jnp.dot(x, packed["w1t"].T, preferred_element_type=f32)
            + packed["b1t"].T, 0.0)
        z = jnp.maximum(
            jnp.dot(h1.astype(bf), packed["weff"].T, preferred_element_type=f32)
            + packed["beff"].T, 0.0)
        q = z @ packed["wq2"] + packed["bq2"]
        return q.reshape(N_EPISODE, -1)

    q_m = ref_matched(packed, state, action, hidden)
    assert jnp.allclose(q, q_m, atol=2e-3, rtol=2e-3), (q, q_m)

    # Reference 2 (loose): the original unfused module structure in full f32 —
    # verifies the pack-time layer fusion is algebraically faithful.
    def ref_f32(params, state, action, hidden):
        s = state.reshape(-1, STATE_SHAPE)
        a = action.reshape(-1, N_AGENTS)
        h = hidden.reshape(-1, HIDDEN_SHAPE * N_AGENTS)
        sapair = jnp.concatenate([s, a], axis=1)
        sa = jnp.maximum(sapair @ params["w_sa1"] + params["b_sa1"], 0.0)
        sa = sa @ params["w_sa2"] + params["b_sa2"]
        hh = jnp.maximum(h @ params["w_h1"] + params["b_h1"], 0.0)
        hh = hh @ params["w_h2"] + params["b_h2"]
        sah = jnp.concatenate([sa, hh], axis=1)
        z = jnp.maximum(sah @ params["w_q1"] + params["b_q1"], 0.0)
        q = z @ params["w_q2"] + params["b_q2"]
        return q.reshape(N_EPISODE, -1)

    q_f = ref_f32(params, state, action, hidden)
    assert jnp.allclose(q, q_f, atol=5e-2, rtol=5e-2), (q, q_f)

    print("KERNEL_OK")
</pallas_src>

<mosaic_0001>
module attributes {stable_mosaic.version = 11 : i64} {
  func.func @qtran_qnet_kernel(%arg0: i32, %arg1: memref<160x128xbf16, #tpu.memory_space<vmem>>, %arg2: memref<64x160xbf16, #tpu.memory_space<vmem>>, %arg3: memref<64x1xf32, #tpu.memory_space<vmem>>, %arg4: memref<32x64xbf16, #tpu.memory_space<vmem>>, %arg5: memref<32x1xf32, #tpu.memory_space<vmem>>, %arg6: memref<32x1xf32, #tpu.memory_space<vmem>>, %arg7: memref<1x1xf32, #tpu.memory_space<vmem>>, %arg8: memref<1x128xf32, #tpu.memory_space<vmem>>) attributes {dimension_semantics = [#tpu.dimension_semantics<parallel>], iteration_bounds = array<i64: 1>, scalar_prefetch = 0 : i64, scratch_operands = 0 : i64, tpu.core_type = #tpu.core_type<tc>, window_params = [{transform_indices = @transform_0, window_bounds = array<i64: 160, 128>}, {pipeline_mode = #tpu.pipeline_mode<synchronous>, transform_indices = @transform_1, window_bounds = array<i64: 64, 160>}, {pipeline_mode = #tpu.pipeline_mode<synchronous>, transform_indices = @transform_2, window_bounds = array<i64: 64, 1>}, {pipeline_mode = #tpu.pipeline_mode<synchronous>, transform_indices = @transform_3, window_bounds = array<i64: 32, 64>}, {pipeline_mode = #tpu.pipeline_mode<synchronous>, transform_indices = @transform_4, window_bounds = array<i64: 32, 1>}, {pipeline_mode = #tpu.pipeline_mode<synchronous>, transform_indices = @transform_5, window_bounds = array<i64: 32, 1>}, {pipeline_mode = #tpu.pipeline_mode<synchronous>, transform_indices = @transform_6, window_bounds = array<i64: 1, 1>}, {transform_indices = @transform_7, window_bounds = array<i64: 1, 128>}]} {
    %c0 = arith.constant 0 : index
    %c0_0 = arith.constant 0 : index
    %0 = vector.load %arg1[%c0, %c0_0] : memref<160x128xbf16, #tpu.memory_space<vmem>>, vector<160x128xbf16>
    %c0_1 = arith.constant 0 : index
    %c0_2 = arith.constant 0 : index
    %1 = vector.load %arg2[%c0_1, %c0_2] : memref<64x160xbf16, #tpu.memory_space<vmem>>, vector<64x160xbf16>
    %cst = arith.constant dense<0.000000e+00> : vector<64x128xf32>
    %2 = tpu.matmul %1, %0, %cst {dimension_numbers = #tpu.dot_dimension_numbers<[1], [0], [0], [1], [0, 0, 1, 1], [], []>} : vector<64x160xbf16>, vector<160x128xbf16>, vector<64x128xf32> -> vector<64x128xf32>
    %c0_3 = arith.constant 0 : index
    %c0_4 = arith.constant 0 : index
    %3 = vector.load %arg3[%c0_3, %c0_4] : memref<64x1xf32, #tpu.memory_space<vmem>>, vector<64x1xf32>
    %4 = vector.broadcast %3 : vector<64x1xf32> to vector<64x128xf32>
    %5 = arith.addf %2, %4 : vector<64x128xf32>
    %cst_5 = arith.constant 0.000000e+00 : f32
    %6 = vector.broadcast %cst_5 : f32 to vector<64x128xf32>
    %7 = arith.maximumf %5, %6 : vector<64x128xf32>
    %c0_6 = arith.constant 0 : index
    %c0_7 = arith.constant 0 : index
    %8 = vector.load %arg4[%c0_6, %c0_7] : memref<32x64xbf16, #tpu.memory_space<vmem>>, vector<32x64xbf16>
    %9 = arith.truncf %7 : vector<64x128xf32> to vector<64x128xbf16>
    %cst_8 = arith.constant dense<0.000000e+00> : vector<32x128xf32>
    %10 = tpu.matmul %8, %9, %cst_8 {dimension_numbers = #tpu.dot_dimension_numbers<[1], [0], [0], [1], [0, 0, 1, 1], [], []>} : vector<32x64xbf16>, vector<64x128xbf16>, vector<32x128xf32> -> vector<32x128xf32>
    %c0_9 = arith.constant 0 : index
    %c0_10 = arith.constant 0 : index
    %11 = vector.load %arg5[%c0_9, %c0_10] : memref<32x1xf32, #tpu.memory_space<vmem>>, vector<32x1xf32>
    %12 = vector.broadcast %11 : vector<32x1xf32> to vector<32x128xf32>
    %13 = arith.addf %10, %12 : vector<32x128xf32>
    %cst_11 = arith.constant 0.000000e+00 : f32
    %14 = vector.broadcast %cst_11 : f32 to vector<32x128xf32>
    %15 = arith.maximumf %13, %14 : vector<32x128xf32>
    %c0_12 = arith.constant 0 : index
    %c0_13 = arith.constant 0 : index
    %16 = vector.load %arg6[%c0_12, %c0_13] : memref<32x1xf32, #tpu.memory_space<vmem>>, vector<32x1xf32>
    %17 = vector.broadcast %16 : vector<32x1xf32> to vector<32x128xf32>
    %18 = arith.mulf %15, %17 : vector<32x128xf32>
    %cst_14 = arith.constant dense<0.000000e+00> : vector<128xf32>
    %19 = vector.multi_reduction <add>, %18, %cst_14 [0] : vector<32x128xf32> to vector<128xf32>
    %20 = vector.shape_cast %19 : vector<128xf32> to vector<1x128xf32>
    %c0_15 = arith.constant 0 : index
    %c0_16 = arith.constant 0 : index
    %21 = vector.load %arg7[%c0_15, %c0_16] : memref<1x1xf32, #tpu.memory_space<vmem>>, vector<1x1xf32>
    %22 = vector.broadcast %21 : vector<1x1xf32> to vector<1x128xf32>
    %23 = arith.addf %20, %22 : vector<1x128xf32>
    %c0_17 = arith.constant 0 : index
    %c0_18 = arith.constant 0 : index
    %24 = vector.load %arg8[%c0_17, %c0_18] : memref<1x128xf32, #tpu.memory_space<vmem>>, vector<1x128xf32>
    tpu.vector_store %arg8[%c0_17, %c0_18], %23 {strides = array<i32>} : memref<1x128xf32, #tpu.memory_space<vmem>>, vector<1x128xf32>,
    return
  }
  func.func @transform_0(%arg0: i32) -> (i32, i32) {
    %c0_i32 = arith.constant 0 : i32
    %c0_i32_0 = arith.constant 0 : i32
    return %c0_i32, %arg0 : i32, i32
  }
  func.func @transform_1(%arg0: i32) -> (i32, i32) {
    %c0_i32 = arith.constant 0 : i32
    %c0_i32_0 = arith.constant 0 : i32
    %c0_i32_1 = arith.constant 0 : i32
    return %c0_i32, %c0_i32_0 : i32, i32
  }
  func.func @transform_2(%arg0: i32) -> (i32, i32) {
    %c0_i32 = arith.constant 0 : i32
    %c0_i32_0 = arith.constant 0 : i32
    %c0_i32_1 = arith.constant 0 : i32
    return %c0_i32, %c0_i32_0 : i32, i32
  }
  func.func @transform_3(%arg0: i32) -> (i32, i32) {
    %c0_i32 = arith.constant 0 : i32
    %c0_i32_0 = arith.constant 0 : i32
    %c0_i32_1 = arith.constant 0 : i32
    return %c0_i32, %c0_i32_0 : i32, i32
  }
  func.func @transform_4(%arg0: i32) -> (i32, i32) {
    %c0_i32 = arith.constant 0 : i32
    %c0_i32_0 = arith.constant 0 : i32
    %c0_i32_1 = arith.constant 0 : i32
    return %c0_i32, %c0_i32_0 : i32, i32
  }
  func.func @transform_5(%arg0: i32) -> (i32, i32) {
    %c0_i32 = arith.constant 0 : i32
    %c0_i32_0 = arith.constant 0 : i32
    %c0_i32_1 = arith.constant 0 : i32
    return %c0_i32, %c0_i32_0 : i32, i32
  }
  func.func @transform_6(%arg0: i32) -> (i32, i32) {
    %c0_i32 = arith.constant 0 : i32
    %c0_i32_0 = arith.constant 0 : i32
    %c0_i32_1 = arith.constant 0 : i32
    return %c0_i32, %c0_i32_0 : i32, i32
  }
  func.func @transform_7(%arg0: i32) -> (i32, i32) {
    %c0_i32 = arith.constant 0 : i32
    %c0_i32_0 = arith.constant 0 : i32
    return %c0_i32, %arg0 : i32, i32
  }
}

</mosaic_0001>

<bundles_post_ra>
// kernel: squeeze.1
= control target key start
LH: loop header
LB: loop body
LE: loop exit
PB: predicated region body
PF: predicated region fallthrough
CT: control target
= control target key end

     0   :  { %s85_s0 = inlined_call_operand.vmem [shape: f32[16], index: 0, kind: input, shape index: {}]   ;;  %s86_s1 = inlined_call_operand.hbm [shape: f32[2,8], index: 1, kind: output, shape index: {}]  }
   0x1   :  { %v5_v0 = vld [vmem:[%s85_s0] sm:$0x1] }
   0x2   :  { %2 = vsyncpa [#allocation1], 0  ;;  %6 = vst [vmem:[#allocation3] sm:$0x1] %v5_v0  ;;  %vm8_vm0 = vcmask 64512   ;;  %s58_s0 = smov 120  }
   0x3   :  { %s59_s8 = smov [#allocation0]  }
   0x4   :  { %s26_s9 = sshll.u32 %s59_s8, 4  ;;  %s27_s9 = int_to_ptr.vmem [resolvable:$true] %s26_s9 }
   0x5   :  { %s34_s10 = scalar_lea.vmem %s27_s9, 32  ;;  %p39_p1 = scmp.lt.s32.totalorder %s27_s9, %s27_s9 }
   0x6   :  { %p35_p0 = scmp.ne.s32.totalorder %s27_s9, %s34_s10  ;;  %p40_p2 = scmp.lt.s32.totalorder %s34_s10, %s34_s10 }
   0x8   :  { %p41_p3 = por %p40_p2, %p39_p1 }
   0x9   :  { %v10_v1 = vld [vmem:[#allocation3] sm:$0x1]  }
   0xa   :  { %v7_v2 = vld [vmem:[#allocation3] sm:$0x1]   ;;  %11 = vrot.lane.b32.xlu0 %v10_v1, %s58_s0  ;;  %p42_p4 = pnand %p41_p3, %p35_p0 }
   0xb   :  { %9 = vst.msk [vmem:[#allocation2] sm:$0x1] %vm8_vm0, %v7_v2  }
  0x7c   :  { %v12_v3 = vpop.permute.xlu0 %11  }
  0x7d   :  { %15 = vst.msk [vmem:[#allocation2 + $0x1] sm:$0x1] %vm8_vm0, %v12_v3  }
  0x84   :  { %v19_v4 = vld [vmem:[#allocation2] sm:$0x3] }
  0x85   :  { %21 = vst [vmem:[#allocation0] sm:$0x3] %v19_v4 }
  0x86   :  { %45 = shalt.err (!%p42_p4)
}
  0x87   :  { %s46_s13 = scalar_lea.hbm %s86_s1, 32 }
  0x88   :  { %p47_p5 = scmp.ne.s32.totalorder %s86_s1, %s46_s13  ;;  %p50_p6 = scmp.lt.u32.totalorder %s46_s13, %s86_s1 }
  0x8a   :  { %p52_p7 = pnand %p50_p6, %p47_p5 }
  0x8c   :  { %55 = shalt.err (!%p52_p7)
}
  0x8d   :  { %29 = dma.vmem_to_hbm [thread:$0]  %s27_s9, 32, %s86_s1, [#allocation1]  }
  0x8e   :  { %56 = dma.done.wait [#allocation1], 32  }
  0x8f   :  { %57 = vsyncadd [#allocation1], 4294967264 }
  0x90   :  { %31 = vsyncpa [#allocation1], 1 }

// kernel: qtran_qnet_forward.1
= control target key start
LH: loop header
LB: loop body
LE: loop exit
PB: predicated region body
PF: predicated region fallthrough
CT: control target
= control target key end

     0   :  { %v513_v0 = vmov 0   ;;  %vm201_vm0 = vcmask 261120   ;;  %vm329_vm1 = vcmask 523264   ;;  %s674_s0 = inlined_call_operand.vmem [shape: bf16[160,128], index: 0, kind: input, shape index: {}]   ;;  %s675_s6 = inlined_call_operand.<no memory space> [shape: f32[1,1], index: 6, kind: input, shape index: {}]   ;;  %s676_s1 = inlined_call_operand.vmem [shape: bf16[64,160], index: 1, kind: input, shape index: {}]   ;;  %s677_s2 = inlined_call_operand.vmem [shape: f32[64,1], index: 2, kind: input, shape index: {}]   ;;  %s678_s4 = inlined_call_operand.vmem [shape: f32[32,1], index: 4, kind: input, shape index: {}]   ;;  %s679_s5 = inlined_call_operand.vmem [shape: f32[32,1], index: 5, kind: input, shape index: {}]   ;;  %s680_s3 = inlined_call_operand.vmem [shape: bf16[32,64], index: 3, kind: input, shape index: {}]   ;;  %s681_s7 = inlined_call_operand.vmem [shape: f32[1,128], index: 7, kind: output, shape index: {}]  }
   0x1   :  { %214 = vmatprep.subr.bf16.mxu0 %v513_v0  ;;  %v489_v1 = vld [vmem:[%s674_s0] sm:$0xff]   ;;  %487 = vset.pattern.permute.xlu0 %v513_v0  ;;  %v12_v2 = vstv %s675_s6  ;;  %v490_v3 = vld [vmem:[%s674_s0 + $0x8] sm:$0xff]   ;;  %v491_v4 = vld [vmem:[%s674_s0 + $0x10] sm:$0xff]  }
   0x2   :  { %488 = vset.pattern.permute.xlu1 %v513_v0  ;;  %13 = vst [vmem:[#allocation2] sm:$0x1] %v12_v2  ;;  %215 = vmatpush1.bf16.msra.mxu0 %v489_v1  ;;  %v492_v5 = vld [vmem:[%s674_s0 + $0x18] sm:$0xff]   ;;  %v501_v6 = vld [vmem:[%s676_s1 + $0x4] ss:$8 sps:$4 sm:$0xff]   ;;  %v59_v9 = vld [vmem:[%s677_s2 + $0x10] sm:$0xff] }
   0x3   :  { %216 = vmatprep.subr.bf16.mxu0 %v513_v0  ;;  %460 = vmatprep.mubr.msk.bf16.mxu0 %vm201_vm0, %v501_v6  ;;  %v493_v7 = vld [vmem:[%s674_s0 + $0x20] sm:$0xff]   ;;  %v58_v10 = vld [vmem:[%s677_s2 + $0x8] sm:$0xff]  ;;  %v60_v12 = vld [vmem:[%s677_s2 + $0x18] sm:$0xff] }
   0x4   :  { %v57_v8 = vld [vmem:[%s677_s2] sm:$0xff]  ;;  %77 = vperm.xlu1 %488, %v59_v9   ;;  %v494_v11 = vld [vmem:[%s674_s0 + $0x28] sm:$0xff]   ;;  %v495_v14 = vld [vmem:[%s674_s0 + $0x30] sm:$0xff]  }
   0x5   :  { %67 = vperm.xlu0 %487, %v57_v8   ;;  %v61_v13 = vld [vmem:[%s677_s2 + $0x20] sm:$0xff]  ;;  %v62_v15 = vld [vmem:[%s677_s2 + $0x28] sm:$0xff]  ;;  %v63_v16 = vld [vmem:[%s677_s2 + $0x30] sm:$0xff] }
   0x6   :  { %217 = vmatpush1.bf16.msra.mxu0 %v490_v3  ;;  %v496_v17 = vld [vmem:[%s674_s0 + $0x38] sm:$0xff]   ;;  %v295_v19 = vld [vmem:[%s678_s4] sm:$0xff]  ;;  %v296_v21 = vld [vmem:[%s678_s4 + $0x8] sm:$0xff] }
   0x7   :  { %218 = vmatprep.subr.bf16.mxu0 %v513_v0  ;;  %v64_v18 = vld [vmem:[%s677_s2 + $0x38] sm:$0xff]  ;;  %v497_v20 = vld [vmem:[%s674_s0 + $0x40] sm:$0xff]   ;;  %v297_v22 = vld [vmem:[%s678_s4 + $0x10] sm:$0xff] }
   0x8   :  { %82 = vperm.xlu1 %488, %v60_v12   ;;  %v498_v23 = vld [vmem:[%s674_s0 + $0x48] sm:$0xff]   ;;  %v298_v24 = vld [vmem:[%s678_s4 + $0x18] sm:$0xff]  ;;  %v389_v26 = vld [vmem:[%s679_s5] sm:$0xff] }
   0x9   :  { %72 = vperm.xlu0 %487, %v58_v10   ;;  %v499_v25 = vld [vmem:[%s676_s1] ss:$8 sps:$4 sm:$0xff]   ;;  %v502_v27 = vld [vmem:[%s676_s1 + $0x14] ss:$8 sps:$4 sm:$0xff]   ;;  %v504_v31 = vld [vmem:[%s676_s1 + $0x10] ss:$8 sps:$4 sm:$0xff]  }
   0xa   :  { %219 = vmatpush1.bf16.msra.mxu0 %v491_v4  ;;  %v390_v28 = vld [vmem:[%s679_s5 + $0x8] sm:$0xff]  ;;  %v391_v29 = vld [vmem:[%s679_s5 + $0x10] sm:$0xff]  ;;  %v392_v30 = vld [vmem:[%s679_s5 + $0x18] sm:$0xff] }
   0xb   :  { %220 = vmatprep.subr.bf16.mxu0 %v513_v0  ;;  %v426_v32 = vld [vmem:[#allocation2] sm:$0x1]  ;;  %v505_v33 = vld [vmem:[%s676_s1 + $0x24] ss:$8 sps:$4 sm:$0xff]   ;;  %v508_v35 = vld [vmem:[%s676_s1 + $0x34] ss:$8 sps:$4 sm:$0xff]  }
   0xc   :  { %92 = vperm.xlu1 %488, %v62_v15   ;;  %v507_v34 = vld [vmem:[%s676_s1 + $0x20] ss:$8 sps:$4 sm:$0xff]   ;;  %v510_v36 = vld [vmem:[%s676_s1 + $0x30] ss:$8 sps:$4 sm:$0xff]  }
   0xd   :  { %87 = vperm.xlu0 %487, %v61_v13   ;;  %v511_v37 = vld [vmem:[%s680_s3] sm:$0xff]  }
   0xe   :  { %221 = vmatpush1.bf16.msra.mxu0 %v492_v5  ;;  %482 = vmatprep.mubr.msk.bf16.mxu1 %vm329_vm1, %v511_v37 }
   0xf   :  { %222 = vmatprep.subr.bf16.mxu0 %v513_v0 }
  0x10   :  { %102 = vperm.xlu1 %488, %v64_v18   ;;  %v512_v18 = vld [vmem:[%s680_s3 + $0x8] sm:$0xff]  }
  0x11   :  { %97 = vperm.xlu0 %487, %v63_v16  }
  0x12   :  { %223 = vmatpush1.bf16.msra.mxu0 %v493_v7 }
  0x13   :  { %224 = vmatprep.subr.bf16.mxu0 %v513_v0 }
  0x14   :  { %306 = vperm.xlu1 %488, %v296_v21  }
  0x15   :  { %301 = vperm.xlu0 %487, %v295_v19  }
  0x16   :  { %225 = vmatpush1.bf16.msra.mxu0 %v494_v11 }
  0x17   :  { %226 = vmatprep.subr.bf16.mxu0 %v513_v0 }
  0x18   :  { %316 = vperm.xlu1 %488, %v298_v24  }
  0x19   :  { %311 = vperm.xlu0 %487, %v297_v22  }
  0x1a   :  { %227 = vmatpush1.bf16.msra.mxu0 %v495_v14 }
  0x1b   :  { %228 = vmatprep.subr.bf16.mxu0 %v513_v0 }
  0x1c   :  { %400 = vperm.xlu1 %488, %v390_v28  }
  0x1d   :  { %395 = vperm.xlu0 %487, %v389_v26  }
  0x1e   :  { %229 = vmatpush1.bf16.msra.mxu0 %v496_v17 }
  0x1f   :  { %230 = vmatprep.subr.bf16.mxu0 %v513_v0 }
  0x20   :  { %410 = vperm.xlu1 %488, %v392_v30  }
  0x21   :  { %405 = vperm.xlu0 %487, %v391_v29  }
  0x22   :  { %231 = vmatpush1.bf16.msra.mxu0 %v497_v20 }
  0x23   :  { %232 = vmatprep.subr.bf16.mxu0 %v513_v0 }
  0x25   :  { %429 = vperm.xlu0 %487, %v426_v32  }
  0x26   :  { %233 = vmatpush1.bf16.msra.mxu0 %v498_v23 }
  0x29   :  { %247 = vmatmul.mubr.bf16.vlgmr.msra.gmra.mrb[0].mxu0 %v499_v25 }
  0x2a   :  { %461 = vmatprep.mubr.msk.bf16.mxu0 %vm201_vm0, %v502_v27 }
  0x31   :  { %255 = vmatmul.mubr.bf16.gmra.mrb[4].mxu0 %v504_v31 }
  0x32   :  { %462 = vmatprep.mubr.msk.bf16.mxu0 %vm201_vm0, %v505_v33 }
  0x39   :  { %263 = vmatmul.mubr.bf16.gmra.mrb[8].mxu0 %v507_v34 }
  0x3a   :  { %463 = vmatprep.mubr.msk.bf16.mxu0 %vm201_vm0, %v508_v35 }
  0x41   :  { %271 = vmatmul.mubr.bf16.gmra.mrb[12].mxu0 %v510_v36 }
  0x83   :  { %v78_v46 = vpop.permute.xlu1 %77 }
  0x84   :  { %v68_v38 = vpop.permute.xlu0 %67 }
  0x87   :  { %v83_v53 = vpop.permute.xlu1 %82 }
  0x88   :  { %v73_v42 = vpop.permute.xlu0 %72 }
  0x8b   :  { %v93_v0 = vpop.permute.xlu1 %92 }
  0x8c   :  { %v88_v60 = vpop.permute.xlu0 %87 }
  0x8f   :  { %v103_v11 = vpop.permute.xlu1 %102 }
  0x90   :  { %v98_v7 = vpop.permute.xlu0 %97 }
  0x93   :  { %v307_v20 = vpop.permute.xlu1 %306 }
  0x94   :  { %v302_v19 = vpop.permute.xlu0 %301 }
  0x97   :  { %v317_v22 = vpop.permute.xlu1 %316 }
  0x98   :  { %v312_v21 = vpop.permute.xlu0 %311 }
  0x9b   :  { %v401_v33 = vpop.permute.xlu1 %400 }
  0x9c   :  { %v396_v28 = vpop.permute.xlu0 %395 }
  0xfc   :  { %v248_v39 = vpop.f32.mrb[0].mxu0 }
  0xfd   :  { %v249_v40 = vadd.f32 %v248_v39, %v68_v38  ;;  %v250_v41 = vpop.f32.mrb[1].mxu0  ;;  %v406_v39 = vpop.permute.xlu0 %405 }
  0xfe   :  { %v251_v43 = vpop.f32.mrb[2].mxu0 }
  0xff   :  { %v252_v44 = vadd.f32 %v251_v43, %v73_v42  ;;  %v253_v45 = vpop.f32.mrb[3].mxu0  ;;  %v279_v47 = vmax.f32 %v249_v40, 0.0  ;;  %v411_v42 = vpop.permute.xlu1 %410 }
 0x100   :  { %v432_v45 = vlaneseq }
 0x101   :  { %v280_v48 = vmax.f32 %v252_v44, 0.0 }
 0x103   :  { %v291_v49 = vpack.c.bf16 %v280_v48, %v279_v47  ;;  %v433_v48 = vshrl.u32 %v432_v45, 7 }
 0x104   :  { %v256_v50 = vpop.f32.mrb[4].mxu0 }
 0x105   :  { %v257_v51 = vadd.f32 %v256_v50, %v78_v46  ;;  %v258_v52 = vpop.f32.mrb[5].mxu0  ;;  %474 = vmatprep.subr.bf16.mxu1 %v291_v49 }
 0x106   :  { %v259_v54 = vpop.f32.mrb[6].mxu0  ;;  %475 = vmatpush3.bf16.msra.mxu1 %v291_v49 }
 0x107   :  { %v260_v55 = vadd.f32 %v259_v54, %v83_v53  ;;  %v261_v56 = vpop.f32.mrb[7].mxu0  ;;  %v281_v57 = vmax.f32 %v257_v51, 0.0  ;;  %v434_v51 = vsub.s32 0, %v433_v48  ;;  %v430_v53 = vpop.permute.xlu0 %429 }
 0x109   :  { %v282_v58 = vmax.f32 %v260_v55, 0.0  ;;  %v435_v55 = vrot.slane %v430_v53, %v434_v51 }
 0x10b   :  { %v292_v59 = vpack.c.bf16 %v282_v58, %v281_v57 }
 0x10c   :  { %v264_v61 = vpop.f32.mrb[8].mxu0 }
 0x10d   :  { %v265_v62 = vadd.f32 %v264_v61, %v88_v60  ;;  %v266_v63 = vpop.f32.mrb[9].mxu0  ;;  %476 = vmatprep.subr.bf16.mxu1 %v292_v59 }
 0x10e   :  { %v267_v1 = vpop.f32.mrb[10].mxu0  ;;  %477 = vmatpush3.bf16.msra.mxu1 %v292_v59 }
 0x10f   :  { %v268_v2 = vadd.f32 %v267_v1, %v93_v0  ;;  %v269_v3 = vpop.f32.mrb[11].mxu0  ;;  %v283_v4 = vmax.f32 %v265_v62, 0.0 }
 0x111   :  { %v284_v5 = vmax.f32 %v268_v2, 0.0 }
 0x113   :  { %v293_v6 = vpack.c.bf16 %v284_v5, %v283_v4 }
 0x114   :  { %v272_v8 = vpop.f32.mrb[12].mxu0 }
 0x115   :  { %v273_v9 = vadd.f32 %v272_v8, %v98_v7  ;;  %v274_v10 = vpop.f32.mrb[13].mxu0  ;;  %478 = vmatprep.subr.bf16.mxu1 %v293_v6 }
 0x116   :  { %v275_v12 = vpop.f32.mrb[14].mxu0  ;;  %479 = vmatpush3.bf16.msra.mxu1 %v293_v6 }
 0x117   :  { %v276_v13 = vadd.f32 %v275_v12, %v103_v11  ;;  %v277_v14 = vpop.f32.mrb[15].mxu0  ;;  %v285_v15 = vmax.f32 %v273_v9, 0.0 }
 0x119   :  { %v286_v16 = vmax.f32 %v276_v13, 0.0 }
 0x11b   :  { %v294_v17 = vpack.c.bf16 %v286_v16, %v285_v15 }
 0x11d   :  { %480 = vmatprep.subr.bf16.mxu1 %v294_v17 }
 0x11e   :  { %481 = vmatpush3.bf16.msra.mxu1 %v294_v17 }
 0x121   :  { %483 = vmatmul.mubr.msk.bf16.vlgmr.msra.gmra.mrb[0].mxu1 %vm329_vm1, %v512_v18 }
 0x1f4   :  { %v484_v23 = vpop.f32.mrb[0].mxu1 }
 0x1f5   :  { %v370_v24 = vpop.f32.mrb[1].mxu1  ;;  %v379_v25 = vadd.f32 %v484_v23, %v312_v21 }
 0x1f6   :  { %v371_v26 = vadd.f32 %v370_v24, %v302_v19  ;;  %v485_v27 = vpop.f32.mrb[2].mxu1 }
 0x1f7   :  { %v373_v29 = vpop.f32.mrb[3].mxu1  ;;  %v382_v31 = vadd.f32 %v485_v27, %v317_v22  ;;  %v387_v34 = vmax.f32 %v379_v25, 0.0 }
 0x1f8   :  { %v385_v30 = vmax.f32 %v371_v26, 0.0  ;;  %v374_v32 = vadd.f32 %v373_v29, %v307_v20 }
 0x1f9   :  { %v388_v37 = vmax.f32 %v382_v31, 0.0  ;;  %v415_v40 = vmul.f32 %v406_v39, %v387_v34 }
 0x1fa   :  { %v386_v35 = vmax.f32 %v374_v32, 0.0  ;;  %v413_v36 = vmul.f32 %v396_v28, %v385_v30 }
 0x1fb   :  { %v416_v43 = vmul.f32 %v411_v42, %v388_v37 }
 0x1fc   :  { %v414_v38 = vmul.f32 %v401_v33, %v386_v35 }
 0x1fe   :  { %v417_v41 = vadd.f32 %v414_v38, %v413_v36 }
 0x200   :  { %v418_v44 = vadd.f32 %v417_v41, %v415_v40 }
 0x202   :  { %v419_v46 = vadd.f32 %v418_v44, %v416_v43 }
 0x204   :  { %v420_v47 = vrot.slane %v419_v46, 4 }
 0x206   :  { %v421_v49 = vadd.f32 %v420_v47, %v419_v46 }
 0x208   :  { %v422_v50 = vrot.slane %v421_v49, 2 }
 0x20a   :  { %v423_v52 = vadd.f32 %v422_v50, %v421_v49 }
 0x20c   :  { %v424_v54 = vrot.slane %v423_v52, 1 }
 0x20e   :  { %v425_v56 = vadd.f32 %v424_v54, %v423_v52 }
 0x210   :  { %v436_v57 = vadd.f32 %v435_v55, %v425_v56 }
 0x212   :  { %437 = vst [vmem:[%s681_s7] sm:$0x1] %v436_v57 }

</bundles_post_ra>
